<compile_context>
chip_gen: v6e
topology: v6e:2x2x1
jax: 0.10.0
libtpu: 0.0.40
codegen_flags: <defaults>
</compile_context>

<pallas_src>
import functools
import math

import jax
import jax.numpy as jnp
from jax.experimental import pallas as pl
from jax.experimental.pallas import tpu as pltpu


def _vmem_capacity_bytes():
    """Physical VMEM per core (generation-aware); conservative fallback."""
    try:
        return int(pltpu.get_tpu_info().vmem_capacity_bytes)
    except Exception:
        return 64 * 1024 * 1024          # v7x per-TC value = safest assumption


# ---------------------------------------------------------------------------
# Fused kernel: qkv linear -> W-MSA (+bias +mask, softmax) -> output projection
# ---------------------------------------------------------------------------

def _fused_wmsa_kernel(*refs, num_heads, scale, tokens_per_window, groups,
                       has_table):
    """One grid step = a block of `Bblk` windows through the whole module.

    refs (in order):
      x            : (Bblk*N, C)   token-flat rows of the window block
      w_q/w_k/w_v  : (C, C)        resident qkv weight column-slices
      b_q/b_k/b_v  : (1, C)        resident qkv bias slices
      w_p, b_p     : (C, C),(1, C) resident output projection
      tbl          : (Ht, G, N, N) [optional] resident combined rpb+mask table
      o            : (Bblk*N, C)   output rows (head-merged, lane-dense)
    """
    it = iter(refs)
    x_ref = next(it)
    wq_ref, wk_ref, wv_ref = next(it), next(it), next(it)
    bq_ref, bk_ref, bv_ref = next(it), next(it), next(it)
    wp_ref, bp_ref = next(it), next(it)
    tbl_ref = next(it) if has_table else None
    o_ref = next(it)

    R, C = x_ref.shape
    N = tokens_per_window
    Bblk = R // N
    H = num_heads
    Dh = C // H
    G = groups
    rep = Bblk // G

    x2 = x_ref[...]                                            # (R, C)

    # ---- fused qkv projection: three resident-weight 2-D MXU matmuls --------
    q2 = (jnp.dot(x2, wq_ref[...], preferred_element_type=jnp.float32)
          + bq_ref[...]) * scale                               # scale on q (ref order)
    k2 = jnp.dot(x2, wk_ref[...], preferred_element_type=jnp.float32) + bk_ref[...]
    v2 = jnp.dot(x2, wv_ref[...], preferred_element_type=jnp.float32) + bv_ref[...]

    # ---- head split: ONE relayout per tensor (slices + leading concat), -----
    # ---- no per-head duplicated compute downstream.                     -----
    def to_heads(t2):
        t3 = t2.reshape(Bblk, N, C)
        return jnp.concatenate(
            [t3[:, :, h * Dh:(h + 1) * Dh] for h in range(H)], axis=0)  # (H*Bblk,N,Dh)

    qh, kh, vh = to_heads(q2), to_heads(k2), to_heads(v2)

    # ---- scores for all windows x heads in ONE batched contraction ----------
    s = jnp.einsum("znd,zmd->znm", qh, kh,
                   preferred_element_type=jnp.float32)         # (H*Bblk, N, N) f32

    # ---- single add of the pre-combined (rel-pos bias + mask) table ---------
    if has_table:
        tbl = tbl_ref[...]                                     # (Ht, G, N, N) f32
        if G == 1:
            s = (s.reshape(H, Bblk, N, N) + tbl).reshape(H * Bblk, N, N)
        elif rep == 1:
            s = (s.reshape(H, G, N, N) + tbl).reshape(H * Bblk, N, N)
        else:
            # block spans several mask periods: broadcast over the period axis
            s = (s.reshape(H, rep, G, N, N) + tbl[:, None]).reshape(H * Bblk, N, N)

    # ---- numerically-stable softmax, normalization deferred past P@V --------
    s = s - jnp.max(s, axis=-1, keepdims=True)
    p = jnp.exp(s)
    denom = jnp.sum(p, axis=-1, keepdims=True)                 # (H*Bblk, N, 1)
    inv = pl.reciprocal(denom, approx=True)                    # EUP slot (free-ish)
    inv = inv * (2.0 - denom * inv)                            # 1 Newton step ~f32 exact

    o = jnp.einsum("znm,zmd->znd", p, vh,
                   preferred_element_type=jnp.float32)         # (H*Bblk, N, Dh)
    o = o * inv                                                # N*Dh mults/row, not N*N

    # ---- merge heads -> (rows, C) lane-dense slab, fused output projection --
    o4 = o.reshape(H, Bblk, N, Dh)
    oc = jnp.concatenate([o4[h] for h in range(H)], axis=-1)   # (Bblk, N, C)
    y = (jnp.dot(oc.reshape(R, C), wp_ref[...],
                 preferred_element_type=jnp.float32) + bp_ref[...])
    o_ref[...] = y.astype(o_ref.dtype)
    # TODO(synk): attn_drop / proj_drop are identity in eval mode (p=0.0) — omitted.


def _pick_block_windows(n_windows, group, num_heads, N, C, budget_bytes,
                        target_steps=4):
    """Largest Bblk = group*k (k | n_windows//group) whose per-step working set
    fits `budget_bytes` while keeping at least `target_steps` grid steps
    (pipelining + both v7x TensorCores)."""
    n_groups = n_windows // group
    # f32 working set per window: double-buffered x/out blocks (2x2), q/k/v plus
    # their head-major copies (~6), proj/output temps (~3), scores+probs (~3 H N).
    per_win = 4 * (13 * N * C + 3 * num_heads * N * N)
    min_steps = min(target_steps, n_groups)
    best = 1
    for k in range(1, n_groups + 1):
        if n_groups % k:
            continue
        if n_groups // k < min_steps:
            break                      # k is ascending: larger k only worse
        if k * group * per_win <= budget_bytes:
            best = k
    return best * group, per_win


def window_attention_forward(prep, x, num_heads, mask=None, qk_scale=None):
    """x: (B_, N, C); mask: (nW, N, N) additive or None.  Returns (B_, N, C)."""
    B_, N, C = x.shape
    assert C % num_heads == 0
    head_dim = C // num_heads
    scale = float(qk_scale) if qk_scale is not None else head_dim ** (-0.5)

    bias = prep["bias_hnn"]                                    # (H, N, N) f32 or None
    if mask is not None:
        mask = mask.astype(jnp.float32)

    # One resident additive table (bias + mask combined -> a single VPU add per
    # score element inside the kernel).
    # TODO(synk): for very large H*nW*N^2 fall back to two separate broadcast adds.
    if bias is not None and mask is not None:
        tbl = bias[:, None, :, :] + mask[None, :, :, :]        # (H, nW, N, N)
    elif bias is not None:
        tbl = bias[:, None, :, :]                              # (H, 1, N, N)
    elif mask is not None:
        tbl = mask[None, :, :, :]                              # (1, nW, N, N)
    else:
        tbl = None
    G = int(mask.shape[0]) if mask is not None else 1
    assert B_ % G == 0, "num_windows*B must be a multiple of nW"

    # ---- generation-aware VMEM budgeting & block-of-windows choice ----------
    cap = _vmem_capacity_bytes()
    vmem_limit = min(100 * 1024 * 1024, cap // 2)   # ~64 MiB on v5e/v6e, ~32 MiB on v7x
    resident = 4 * (4 * C * C + 4 * C)              # w_q/w_k/w_v/w_proj + biases (f32)
    if tbl is not None:
        resident += int(tbl.size) * 4
    budget = max(0, int(0.6 * (vmem_limit - 2 * resident)))
    Bblk, per_win = _pick_block_windows(B_, G, num_heads, N, C, budget)
    vmem_limit = int(min(int(0.9 * cap),
                         max(vmem_limit,
                             2 * resident + Bblk * per_win + (4 << 20))))

    # token-flat views (free host-side reshape) so every in-kernel matmul is 2-D
    x2 = x.reshape(B_ * N, C)

    in_specs = [
        pl.BlockSpec((Bblk * N, C), lambda i: (i, 0)),         # window-block rows
        pl.BlockSpec((C, C), lambda i: (0, 0)),                # resident w_q
        pl.BlockSpec((C, C), lambda i: (0, 0)),                # resident w_k
        pl.BlockSpec((C, C), lambda i: (0, 0)),                # resident w_v
        pl.BlockSpec((1, C), lambda i: (0, 0)),                # resident b_q
        pl.BlockSpec((1, C), lambda i: (0, 0)),                # resident b_k
        pl.BlockSpec((1, C), lambda i: (0, 0)),                # resident b_v
        pl.BlockSpec((C, C), lambda i: (0, 0)),                # resident w_proj
        pl.BlockSpec((1, C), lambda i: (0, 0)),                # resident b_proj
    ]
    args = [x2, prep["w_q"], prep["w_k"], prep["w_v"],
            prep["b_q"], prep["b_k"], prep["b_v"],
            prep["w_proj"], prep["b_proj"]]
    if tbl is not None:
        Ht = int(tbl.shape[0])
        in_specs.append(pl.BlockSpec((Ht, G, N, N), lambda i: (0, 0, 0, 0)))
        args.append(tbl)

    kern = functools.partial(
        _fused_wmsa_kernel, num_heads=num_heads, scale=scale,
        tokens_per_window=N, groups=G, has_table=tbl is not None)

    out = pl.pallas_call(
        kern,
        out_shape=jax.ShapeDtypeStruct((B_ * N, C), x.dtype),
        grid=(B_ // Bblk,),
        in_specs=in_specs,
        out_specs=pl.BlockSpec((Bblk * N, C), lambda i: (i, 0)),
        compiler_params=pltpu.CompilerParams(
            dimension_semantics=("parallel",),
            vmem_limit_bytes=vmem_limit,
        ),
    )(*args)
    return out.reshape(B_, N, C)


# ---------------------------------------------------------------------------
# Parameters (init + one-time preparation)
# ---------------------------------------------------------------------------

@functools.lru_cache(maxsize=None)
def make_relative_position_index(window_size):
    """Replicates the torch buffer `relative_position_index` (N, N) int32."""
    Wh, Ww, Wd = window_size
    coords = jnp.stack(
        jnp.meshgrid(jnp.arange(Wh), jnp.arange(Ww), jnp.arange(Wd), indexing="ij"))
    coords_flatten = coords.reshape(3, -1)                            # (3, N)
    rel = coords_flatten[:, :, None] - coords_flatten[:, None, :]     # (3, N, N)
    rel = jnp.transpose(rel, (1, 2, 0))                               # (N, N, 3)
    rel = rel + jnp.array([Wh - 1, Ww - 1, Wd - 1])
    rel = rel * jnp.array([(2 * Ww - 1) * (2 * Wd - 1), (2 * Wd - 1), 1])
    return jnp.sum(rel, axis=-1).astype(jnp.int32)                    # (N, N)


def init_window_attention_params(key, dim, window_size, num_heads):
    Wh, Ww, Wd = window_size
    num_rel = (2 * Wh - 1) * (2 * Ww - 1) * (2 * Wd - 1)
    k1, k2, k3, k4, k5, _ = jax.random.split(key, 6)

    # trunc_normal_(std=0.02, a=-2, b=2)
    rpb_table = 0.02 * jax.random.truncated_normal(
        k1, -2.0, 2.0, (num_rel, num_heads), dtype=jnp.float32)
    # nn.Linear-style init (uniform in +-1/sqrt(fan_in))
    lim = 1.0 / math.sqrt(dim)
    w_qkv = jax.random.uniform(k2, (dim, 3 * dim), jnp.float32, -lim, lim)
    b_qkv = jax.random.uniform(k3, (3 * dim,), jnp.float32, -lim, lim)
    w_proj = jax.random.uniform(k4, (dim, dim), jnp.float32, -lim, lim)
    b_proj = jax.random.uniform(k5, (dim,), jnp.float32, -lim, lim)

    return {"rpb_table": rpb_table, "w_qkv": w_qkv, "b_qkv": b_qkv,
            "w_proj": w_proj, "b_proj": b_proj}


def prepare_params(params, dim, window_size, num_heads, rpb=True):
    """One-time prep: split w_qkv/b_qkv into q/k/v slices and pre-gather the
    (H, N, N) relative-position bias (meshgrid/gather/transpose not re-run per
    forward call)."""
    C = dim
    if rpb:
        ws = tuple(int(w) for w in window_size)
        N = ws[0] * ws[1] * ws[2]
        rpi = make_relative_position_index(ws)                        # (N, N)
        bias = params["rpb_table"][rpi.reshape(-1)].reshape(N, N, num_heads)
        bias = jnp.transpose(bias, (2, 0, 1)).astype(jnp.float32)     # (H, N, N)
    else:
        bias = None
    w_qkv, b_qkv = params["w_qkv"], params["b_qkv"]
    return {
        "w_q": w_qkv[:, :C], "w_k": w_qkv[:, C:2 * C], "w_v": w_qkv[:, 2 * C:],
        "b_q": b_qkv[:C].reshape(1, C),
        "b_k": b_qkv[C:2 * C].reshape(1, C),
        "b_v": b_qkv[2 * C:].reshape(1, C),
        "w_proj": params["w_proj"], "b_proj": params["b_proj"].reshape(1, C),
        "bias_hnn": bias,
    }


# ---------------------------------------------------------------------------
# Pure-JAX reference (faithful to the PyTorch module, for correctness checking)
# ---------------------------------------------------------------------------

def reference_forward(params, x, window_size, num_heads, mask=None, rpb=True):
    B_, N, C = x.shape
    head_dim = C // num_heads
    scale = head_dim ** (-0.5)

    qkv = x @ params["w_qkv"] + params["b_qkv"]
    qkv = qkv.reshape(B_, N, 3, num_heads, head_dim).transpose(2, 0, 3, 1, 4)
    q, k, v = qkv[0] * scale, qkv[1], qkv[2]

    attn = jnp.einsum("bhnd,bhmd->bhnm", q, k)
    if rpb:
        rpi = make_relative_position_index(tuple(int(w) for w in window_size))
        bias = params["rpb_table"][rpi.reshape(-1)].reshape(N, N, num_heads)
        attn = attn + jnp.transpose(bias, (2, 0, 1))[None]
    if mask is not None:
        nW = mask.shape[0]
        attn = attn.reshape(B_ // nW, nW, num_heads, N, N) + mask[None, :, None]
        attn = attn.reshape(B_, num_heads, N, N)
    attn = jax.nn.softmax(attn, axis=-1)
    out = jnp.einsum("bhnm,bhmd->bhnd", attn, v)
    out = out.transpose(0, 2, 1, 3).reshape(B_, N, C)
    return out @ params["w_proj"] + params["b_proj"]


# ---------------------------------------------------------------------------
# main
# ---------------------------------------------------------------------------

if __name__ == "__main__":
    key = jax.random.PRNGKey(0)
    k_param, k_x, k_mask = jax.random.split(key, 3)

    dim = 32
    num_heads = 4
    window_size = (2, 2, 2)          # N = 8 tokens per window
    N = window_size[0] * window_size[1] * window_size[2]
    B = 4                            # batches
    nW = 2                           # windows per batch
    B_ = B * nW                      # num_windows * B = 8

    params = init_window_attention_params(k_param, dim, window_size, num_heads)
    prep = prepare_params(params, dim, window_size, num_heads, rpb=True)

    x = jax.random.normal(k_x, (B_, N, dim), jnp.float32)
    # 0 / -100 additive mask per window (shifted-window style)
    mask_bits = jax.random.bernoulli(k_mask, 0.3, (nW, N, N))
    mask = jnp.where(mask_bits, -100.0, 0.0).astype(jnp.float32)

    out = jax.block_until_ready(
        window_attention_forward(prep, x, num_heads, mask=mask))
    ref = reference_forward(params, x, window_size, num_heads, mask=mask, rpb=True)
    assert out.shape == (B_, N, dim)
    assert jnp.allclose(out, ref, rtol=2e-4, atol=2e-4), \
        "Pallas output mismatch vs reference (masked)"

    # also exercise the mask=None path (separate kernel variant, no zero traffic)
    out2 = jax.block_until_ready(
        window_attention_forward(prep, x, num_heads, mask=None))
    ref2 = reference_forward(params, x, window_size, num_heads, mask=None, rpb=True)
    assert jnp.allclose(out2, ref2, rtol=2e-4, atol=2e-4), \
        "Pallas output mismatch vs reference (no mask)"

    print("KERNEL_OK")
</pallas_src>

<mosaic_0001>
module attributes {stable_mosaic.version = 11 : i64} {
  func.func @_fused_wmsa_kernel(%arg0: i32, %arg1: memref<16x32xf32, #tpu.memory_space<vmem>>, %arg2: memref<32x32xf32, #tpu.memory_space<vmem>>, %arg3: memref<32x32xf32, #tpu.memory_space<vmem>>, %arg4: memref<32x32xf32, #tpu.memory_space<vmem>>, %arg5: memref<1x32xf32, #tpu.memory_space<vmem>>, %arg6: memref<1x32xf32, #tpu.memory_space<vmem>>, %arg7: memref<1x32xf32, #tpu.memory_space<vmem>>, %arg8: memref<32x32xf32, #tpu.memory_space<vmem>>, %arg9: memref<1x32xf32, #tpu.memory_space<vmem>>, %arg10: memref<4x2x8x8xf32, #tpu.memory_space<vmem>>, %arg11: memref<16x32xf32, #tpu.memory_space<vmem>>) attributes {dimension_semantics = [#tpu.dimension_semantics<parallel>], iteration_bounds = array<i64: 4>, scalar_prefetch = 0 : i64, scratch_operands = 0 : i64, tpu.core_type = #tpu.core_type<tc>, window_params = [{transform_indices = @transform_0, window_bounds = array<i64: 16, 32>}, {pipeline_mode = #tpu.pipeline_mode<synchronous>, transform_indices = @transform_1, window_bounds = array<i64: 32, 32>}, {pipeline_mode = #tpu.pipeline_mode<synchronous>, transform_indices = @transform_2, window_bounds = array<i64: 32, 32>}, {pipeline_mode = #tpu.pipeline_mode<synchronous>, transform_indices = @transform_3, window_bounds = array<i64: 32, 32>}, {pipeline_mode = #tpu.pipeline_mode<synchronous>, transform_indices = @transform_4, window_bounds = array<i64: 1, 32>}, {pipeline_mode = #tpu.pipeline_mode<synchronous>, transform_indices = @transform_5, window_bounds = array<i64: 1, 32>}, {pipeline_mode = #tpu.pipeline_mode<synchronous>, transform_indices = @transform_6, window_bounds = array<i64: 1, 32>}, {pipeline_mode = #tpu.pipeline_mode<synchronous>, transform_indices = @transform_7, window_bounds = array<i64: 32, 32>}, {pipeline_mode = #tpu.pipeline_mode<synchronous>, transform_indices = @transform_8, window_bounds = array<i64: 1, 32>}, {pipeline_mode = #tpu.pipeline_mode<synchronous>, transform_indices = @transform_9, window_bounds = array<i64: 4, 2, 8, 8>}, {transform_indices = @transform_10, window_bounds = array<i64: 16, 32>}]} {
    %c0 = arith.constant 0 : index
    %c0_0 = arith.constant 0 : index
    %0 = vector.load %arg1[%c0, %c0_0] : memref<16x32xf32, #tpu.memory_space<vmem>>, vector<16x32xf32>
    %c0_1 = arith.constant 0 : index
    %c0_2 = arith.constant 0 : index
    %1 = vector.load %arg2[%c0_1, %c0_2] : memref<32x32xf32, #tpu.memory_space<vmem>>, vector<32x32xf32>
    %cst = arith.constant dense<0.000000e+00> : vector<16x32xf32>
    %2 = tpu.matmul %0, %1, %cst {dimension_numbers = #tpu.dot_dimension_numbers<[1], [0], [0], [1], [0, 0, 1, 1], [], []>} : vector<16x32xf32>, vector<32x32xf32>, vector<16x32xf32> -> vector<16x32xf32>
    %c0_3 = arith.constant 0 : index
    %c0_4 = arith.constant 0 : index
    %3 = vector.load %arg5[%c0_3, %c0_4] : memref<1x32xf32, #tpu.memory_space<vmem>>, vector<1x32xf32>
    %4 = vector.broadcast %3 : vector<1x32xf32> to vector<16x32xf32>
    %5 = arith.addf %2, %4 : vector<16x32xf32>
    %cst_5 = arith.constant 0.353553385 : f32
    %6 = vector.broadcast %cst_5 : f32 to vector<16x32xf32>
    %7 = arith.mulf %5, %6 : vector<16x32xf32>
    %c0_6 = arith.constant 0 : index
    %c0_7 = arith.constant 0 : index
    %8 = vector.load %arg3[%c0_6, %c0_7] : memref<32x32xf32, #tpu.memory_space<vmem>>, vector<32x32xf32>
    %cst_8 = arith.constant dense<0.000000e+00> : vector<16x32xf32>
    %9 = tpu.matmul %0, %8, %cst_8 {dimension_numbers = #tpu.dot_dimension_numbers<[1], [0], [0], [1], [0, 0, 1, 1], [], []>} : vector<16x32xf32>, vector<32x32xf32>, vector<16x32xf32> -> vector<16x32xf32>
    %c0_9 = arith.constant 0 : index
    %c0_10 = arith.constant 0 : index
    %10 = vector.load %arg6[%c0_9, %c0_10] : memref<1x32xf32, #tpu.memory_space<vmem>>, vector<1x32xf32>
    %11 = vector.broadcast %10 : vector<1x32xf32> to vector<16x32xf32>
    %12 = arith.addf %9, %11 : vector<16x32xf32>
    %c0_11 = arith.constant 0 : index
    %c0_12 = arith.constant 0 : index
    %13 = vector.load %arg4[%c0_11, %c0_12] : memref<32x32xf32, #tpu.memory_space<vmem>>, vector<32x32xf32>
    %cst_13 = arith.constant dense<0.000000e+00> : vector<16x32xf32>
    %14 = tpu.matmul %0, %13, %cst_13 {dimension_numbers = #tpu.dot_dimension_numbers<[1], [0], [0], [1], [0, 0, 1, 1], [], []>} : vector<16x32xf32>, vector<32x32xf32>, vector<16x32xf32> -> vector<16x32xf32>
    %c0_14 = arith.constant 0 : index
    %c0_15 = arith.constant 0 : index
    %15 = vector.load %arg7[%c0_14, %c0_15] : memref<1x32xf32, #tpu.memory_space<vmem>>, vector<1x32xf32>
    %16 = vector.broadcast %15 : vector<1x32xf32> to vector<16x32xf32>
    %17 = arith.addf %14, %16 : vector<16x32xf32>
    %18 = vector.shape_cast %7 : vector<16x32xf32> to vector<2x8x32xf32>
    %19 = vector.extract_strided_slice %18 {offsets = [0, 0, 0], sizes = [2, 8, 8], strides = [1, 1, 1]} : vector<2x8x32xf32> to vector<2x8x8xf32>
    %20 = vector.extract_strided_slice %18 {offsets = [0, 0, 8], sizes = [2, 8, 8], strides = [1, 1, 1]} : vector<2x8x32xf32> to vector<2x8x8xf32>
    %21 = vector.extract_strided_slice %18 {offsets = [0, 0, 16], sizes = [2, 8, 8], strides = [1, 1, 1]} : vector<2x8x32xf32> to vector<2x8x8xf32>
    %22 = vector.extract_strided_slice %18 {offsets = [0, 0, 24], sizes = [2, 8, 8], strides = [1, 1, 1]} : vector<2x8x32xf32> to vector<2x8x8xf32>
    %23 = tpu.concatenate %19, %20, %21, %22 in 0 : vector<2x8x8xf32>, vector<2x8x8xf32>, vector<2x8x8xf32>, vector<2x8x8xf32> -> vector<8x8x8xf32>
    %24 = vector.shape_cast %12 : vector<16x32xf32> to vector<2x8x32xf32>
    %25 = vector.extract_strided_slice %24 {offsets = [0, 0, 0], sizes = [2, 8, 8], strides = [1, 1, 1]} : vector<2x8x32xf32> to vector<2x8x8xf32>
    %26 = vector.extract_strided_slice %24 {offsets = [0, 0, 8], sizes = [2, 8, 8], strides = [1, 1, 1]} : vector<2x8x32xf32> to vector<2x8x8xf32>
    %27 = vector.extract_strided_slice %24 {offsets = [0, 0, 16], sizes = [2, 8, 8], strides = [1, 1, 1]} : vector<2x8x32xf32> to vector<2x8x8xf32>
    %28 = vector.extract_strided_slice %24 {offsets = [0, 0, 24], sizes = [2, 8, 8], strides = [1, 1, 1]} : vector<2x8x32xf32> to vector<2x8x8xf32>
    %29 = tpu.concatenate %25, %26, %27, %28 in 0 : vector<2x8x8xf32>, vector<2x8x8xf32>, vector<2x8x8xf32>, vector<2x8x8xf32> -> vector<8x8x8xf32>
    %30 = vector.shape_cast %17 : vector<16x32xf32> to vector<2x8x32xf32>
    %31 = vector.extract_strided_slice %30 {offsets = [0, 0, 0], sizes = [2, 8, 8], strides = [1, 1, 1]} : vector<2x8x32xf32> to vector<2x8x8xf32>
    %32 = vector.extract_strided_slice %30 {offsets = [0, 0, 8], sizes = [2, 8, 8], strides = [1, 1, 1]} : vector<2x8x32xf32> to vector<2x8x8xf32>
    %33 = vector.extract_strided_slice %30 {offsets = [0, 0, 16], sizes = [2, 8, 8], strides = [1, 1, 1]} : vector<2x8x32xf32> to vector<2x8x8xf32>
    %34 = vector.extract_strided_slice %30 {offsets = [0, 0, 24], sizes = [2, 8, 8], strides = [1, 1, 1]} : vector<2x8x32xf32> to vector<2x8x8xf32>
    %35 = tpu.concatenate %31, %32, %33, %34 in 0 : vector<2x8x8xf32>, vector<2x8x8xf32>, vector<2x8x8xf32>, vector<2x8x8xf32> -> vector<8x8x8xf32>
    "tpu.trace_start"() <{level = 10 : i32, message = "znd,zmd->znm"}> : () -> ()
    %cst_16 = arith.constant dense<0.000000e+00> : vector<8x8x8xf32>
    %36 = tpu.matmul %23, %29, %cst_16 {dimension_numbers = #tpu.dot_dimension_numbers<[2], [2], [1], [1], [0, 0, 0, 1, 1, 1], [0], [0]>} : vector<8x8x8xf32>, vector<8x8x8xf32>, vector<8x8x8xf32> -> vector<8x8x8xf32>
    "tpu.trace_stop"() : () -> ()
    %c0_17 = arith.constant 0 : index
    %c0_18 = arith.constant 0 : index
    %c0_19 = arith.constant 0 : index
    %c0_20 = arith.constant 0 : index
    %37 = vector.load %arg10[%c0_17, %c0_18, %c0_19, %c0_20] : memref<4x2x8x8xf32, #tpu.memory_space<vmem>>, vector<4x2x8x8xf32>
    %38 = vector.shape_cast %36 : vector<8x8x8xf32> to vector<4x2x8x8xf32>
    %39 = arith.addf %38, %37 : vector<4x2x8x8xf32>
    %40 = vector.shape_cast %39 : vector<4x2x8x8xf32> to vector<8x8x8xf32>
    %cst_21 = arith.constant dense<0xFF800000> : vector<8x8xf32>
    %41 = vector.multi_reduction <maximumf>, %40, %cst_21 [2] : vector<8x8x8xf32> to vector<8x8xf32>
    %42 = vector.shape_cast %41 : vector<8x8xf32> to vector<8x8x1xf32>
    %43 = vector.broadcast %42 : vector<8x8x1xf32> to vector<8x8x8xf32>
    %44 = arith.subf %40, %43 : vector<8x8x8xf32>
    %45 = math.exp %44 : vector<8x8x8xf32>
    %cst_22 = arith.constant dense<0.000000e+00> : vector<8x8xf32>
    %46 = vector.multi_reduction <add>, %45, %cst_22 [2] : vector<8x8x8xf32> to vector<8x8xf32>
    %47 = vector.shape_cast %46 : vector<8x8xf32> to vector<8x8x1xf32>
    %48 = tpu.reciprocal %47 {approx = true} : vector<8x8x1xf32> -> vector<8x8x1xf32>
    %49 = arith.mulf %47, %48 : vector<8x8x1xf32>
    %cst_23 = arith.constant 2.000000e+00 : f32
    %50 = vector.broadcast %cst_23 : f32 to vector<8x8x1xf32>
    %51 = arith.subf %50, %49 : vector<8x8x1xf32>
    %52 = arith.mulf %48, %51 : vector<8x8x1xf32>
    "tpu.trace_start"() <{level = 10 : i32, message = "znm,zmd->znd"}> : () -> ()
    %cst_24 = arith.constant dense<0.000000e+00> : vector<8x8x8xf32>
    %53 = tpu.matmul %45, %35, %cst_24 {dimension_numbers = #tpu.dot_dimension_numbers<[2], [1], [1], [2], [0, 0, 0, 1, 1, 2], [0], [0]>} : vector<8x8x8xf32>, vector<8x8x8xf32>, vector<8x8x8xf32> -> vector<8x8x8xf32>
    "tpu.trace_stop"() : () -> ()
    %54 = vector.broadcast %52 : vector<8x8x1xf32> to vector<8x8x8xf32>
    %55 = arith.mulf %53, %54 : vector<8x8x8xf32>
    %56 = vector.shape_cast %55 : vector<8x8x8xf32> to vector<4x2x8x8xf32>
    %57 = vector.extract_strided_slice %56 {offsets = [0, 0, 0, 0], sizes = [1, 2, 8, 8], strides = [1, 1, 1, 1]} : vector<4x2x8x8xf32> to vector<1x2x8x8xf32>
    %58 = vector.shape_cast %57 : vector<1x2x8x8xf32> to vector<2x8x8xf32>
    %59 = vector.extract_strided_slice %56 {offsets = [1, 0, 0, 0], sizes = [1, 2, 8, 8], strides = [1, 1, 1, 1]} : vector<4x2x8x8xf32> to vector<1x2x8x8xf32>
    %60 = vector.shape_cast %59 : vector<1x2x8x8xf32> to vector<2x8x8xf32>
    %61 = vector.extract_strided_slice %56 {offsets = [2, 0, 0, 0], sizes = [1, 2, 8, 8], strides = [1, 1, 1, 1]} : vector<4x2x8x8xf32> to vector<1x2x8x8xf32>
    %62 = vector.shape_cast %61 : vector<1x2x8x8xf32> to vector<2x8x8xf32>
    %63 = vector.extract_strided_slice %56 {offsets = [3, 0, 0, 0], sizes = [1, 2, 8, 8], strides = [1, 1, 1, 1]} : vector<4x2x8x8xf32> to vector<1x2x8x8xf32>
    %64 = vector.shape_cast %63 : vector<1x2x8x8xf32> to vector<2x8x8xf32>
    %65 = tpu.concatenate %58, %60, %62, %64 in 2 : vector<2x8x8xf32>, vector<2x8x8xf32>, vector<2x8x8xf32>, vector<2x8x8xf32> -> vector<2x8x32xf32>
    %66 = vector.shape_cast %65 : vector<2x8x32xf32> to vector<16x32xf32>
    %c0_25 = arith.constant 0 : index
    %c0_26 = arith.constant 0 : index
    %67 = vector.load %arg8[%c0_25, %c0_26] : memref<32x32xf32, #tpu.memory_space<vmem>>, vector<32x32xf32>
    %cst_27 = arith.constant dense<0.000000e+00> : vector<16x32xf32>
    %68 = tpu.matmul %66, %67, %cst_27 {dimension_numbers = #tpu.dot_dimension_numbers<[1], [0], [0], [1], [0, 0, 1, 1], [], []>} : vector<16x32xf32>, vector<32x32xf32>, vector<16x32xf32> -> vector<16x32xf32>
    %c0_28 = arith.constant 0 : index
    %c0_29 = arith.constant 0 : index
    %69 = vector.load %arg9[%c0_28, %c0_29] : memref<1x32xf32, #tpu.memory_space<vmem>>, vector<1x32xf32>
    %70 = vector.broadcast %69 : vector<1x32xf32> to vector<16x32xf32>
    %71 = arith.addf %68, %70 : vector<16x32xf32>
    %c0_30 = arith.constant 0 : index
    %c0_31 = arith.constant 0 : index
    %72 = vector.load %arg11[%c0_30, %c0_31] : memref<16x32xf32, #tpu.memory_space<vmem>>, vector<16x32xf32>
    tpu.vector_store %arg11[%c0_30, %c0_31], %71 {strides = array<i32>} : memref<16x32xf32, #tpu.memory_space<vmem>>, vector<16x32xf32>,
    return
  }
  func.func @transform_0(%arg0: i32) -> (i32, i32) {
    %c0_i32 = arith.constant 0 : i32
    %c0_i32_0 = arith.constant 0 : i32
    return %arg0, %c0_i32 : i32, i32
  }
  func.func @transform_1(%arg0: i32) -> (i32, i32) {
    %c0_i32 = arith.constant 0 : i32
    %c0_i32_0 = arith.constant 0 : i32
    %c0_i32_1 = arith.constant 0 : i32
    return %c0_i32, %c0_i32_0 : i32, i32
  }
  func.func @transform_2(%arg0: i32) -> (i32, i32) {
    %c0_i32 = arith.constant 0 : i32
    %c0_i32_0 = arith.constant 0 : i32
    %c0_i32_1 = arith.constant 0 : i32
    return %c0_i32, %c0_i32_0 : i32, i32
  }
  func.func @transform_3(%arg0: i32) -> (i32, i32) {
    %c0_i32 = arith.constant 0 : i32
    %c0_i32_0 = arith.constant 0 : i32
    %c0_i32_1 = arith.constant 0 : i32
    return %c0_i32, %c0_i32_0 : i32, i32
  }
  func.func @transform_4(%arg0: i32) -> (i32, i32) {
    %c0_i32 = arith.constant 0 : i32
    %c0_i32_0 = arith.constant 0 : i32
    %c0_i32_1 = arith.constant 0 : i32
    return %c0_i32, %c0_i32_0 : i32, i32
  }
  func.func @transform_5(%arg0: i32) -> (i32, i32) {
    %c0_i32 = arith.constant 0 : i32
    %c0_i32_0 = arith.constant 0 : i32
    %c0_i32_1 = arith.constant 0 : i32
    return %c0_i32, %c0_i32_0 : i32, i32
  }
  func.func @transform_6(%arg0: i32) -> (i32, i32) {
    %c0_i32 = arith.constant 0 : i32
    %c0_i32_0 = arith.constant 0 : i32
    %c0_i32_1 = arith.constant 0 : i32
    return %c0_i32, %c0_i32_0 : i32, i32
  }
  func.func @transform_7(%arg0: i32) -> (i32, i32) {
    %c0_i32 = arith.constant 0 : i32
    %c0_i32_0 = arith.constant 0 : i32
    %c0_i32_1 = arith.constant 0 : i32
    return %c0_i32, %c0_i32_0 : i32, i32
  }
  func.func @transform_8(%arg0: i32) -> (i32, i32) {
    %c0_i32 = arith.constant 0 : i32
    %c0_i32_0 = arith.constant 0 : i32
    %c0_i32_1 = arith.constant 0 : i32
    return %c0_i32, %c0_i32_0 : i32, i32
  }
  func.func @transform_9(%arg0: i32) -> (i32, i32, i32, i32) {
    %c0_i32 = arith.constant 0 : i32
    %c0_i32_0 = arith.constant 0 : i32
    %c0_i32_1 = arith.constant 0 : i32
    %c0_i32_2 = arith.constant 0 : i32
    %c0_i32_3 = arith.constant 0 : i32
    return %c0_i32, %c0_i32_0, %c0_i32_1, %c0_i32_2 : i32, i32, i32, i32
  }
  func.func @transform_10(%arg0: i32) -> (i32, i32) {
    %c0_i32 = arith.constant 0 : i32
    %c0_i32_0 = arith.constant 0 : i32
    return %arg0, %c0_i32 : i32, i32
  }
}

</mosaic_0001>

<bundles_post_ra>
// kernel: tpu_custom_call.1
= control target key start
LH: loop header
LB: loop body
LE: loop exit
PB: predicated region body
PF: predicated region fallthrough
CT: control target
= control target key end

     0   :  { %15 = vsyncpa [#allocation3], 0  ;;  %s2994_s0 = inlined_call_operand.vmem [shape: f32[64,32], index: 0, kind: input, shape index: {}]   ;;  %s2995_s1 = inlined_call_operand.vmem [shape: f32[32,32], index: 1, kind: input, shape index: {}]   ;;  %s2996_s2 = inlined_call_operand.hbm [shape: f32[32,32], index: 2, kind: input, shape index: {}]   ;;  %s2997_s3 = inlined_call_operand.hbm [shape: f32[32,32], index: 3, kind: input, shape index: {}]   ;;  %s2998_s4 = inlined_call_operand.vmem [shape: f32[1,32], index: 4, kind: input, shape index: {}]   ;;  %s2999_s5 = inlined_call_operand.vmem [shape: f32[1,32], index: 5, kind: input, shape index: {}]   ;;  %s3000_s6 = inlined_call_operand.vmem [shape: f32[1,32], index: 6, kind: input, shape index: {}]   ;;  %s3001_s7 = inlined_call_operand.hbm [shape: f32[32,32], index: 7, kind: input, shape index: {}]   ;;  %s3002_s8 = inlined_call_operand.vmem [shape: f32[1,32], index: 8, kind: input, shape index: {}]   ;;  %s3003_s9 = inlined_call_operand.vmem [shape: f32[4,2,8,8], index: 9, kind: input, shape index: {}]   ;;  %s3004_s10 = inlined_call_operand.vmem [shape: f32[64,32], index: 10, kind: output, shape index: {}]  }
   0x1   :  { %16 = vsyncpa [#allocation5], 0  ;;  %s2718_s13 = smov 0  }
   0x2 LB: > { %s2242_s14 = sadd.s32 4294967295, %s2648_s13   ;;  %p2244_p0 = scmp.ge.s32.totalorder %s2648_s13, 1  ;;  %s2648_s13 = sphi %s2718_s13, %s22_s13  }
   0x3   : > { %p268_p1 = scmp.lt.s32.totalorder %s2648_s13, 5  ;;  %p2728_p2 = scmp.eq.s32.totalorder %s2242_s14, 0 }
   0x4   : > { %s2650_s17 = smov [#allocation4]   ;;  %s2651_s19 = smov [#allocation2]  }
   0x5   : > { %p2732_p3 = pnand %p2244_p0, %p268_p1  ;;  %s296_s18 = sshll.u32 %s2650_s17, 4  ;;  %s297_s18 = int_to_ptr.vmem [resolvable:$true] %s296_s18 }
   0x6   : > { %s283_s20 = sshll.u32 %s2651_s19, 4  ;;  %s2652_s22 = smov [#allocation6]   ;;  %s284_s20 = int_to_ptr.vmem [resolvable:$true] %s283_s20 }
   0x7   : > { %p2487_p4 = pneg %p2732_p3  ;;  %s318_s23 = sshll.u32 %s2652_s22, 4  ;;  %s2744_s23 = int_to_ptr.vmem [resolvable:$true] %s318_s23 }
   0x8   : > { %s2567_s24 = scalar_lea.vmem %s297_s18, 512  ;;  %p2575_p10 = scmp.lt.s32.totalorder %s297_s18, %s297_s18 }
   0x9   : > { %p2740_p5 = pnand %p2728_p2, %p2487_p4  ;;  %p2568_p7 = scmp.ne.s32.totalorder %s297_s18, %s2567_s24 }
   0xa   : > { %p2576_p11 = scmp.lt.s32.totalorder %s2567_s24, %s2567_s24 }
   0xb   : > { %p2558_p6 = pneg %p2740_p5 }
   0xc   : > { %p2577_p12 = por %p2576_p11, %p2575_p10 }
   0xd   : > { %p2570_p8 = pnand %p2568_p7, %p2558_p6 }
   0xf   : > { %p2571_p9 = pneg %p2570_p8 }
  0x11   : > { %p2578_p13 = pnand %p2577_p12, %p2571_p9 }
  0x13   : > { %2581 = shalt.err (!%p2578_p13)
}
  0x14   : > { %s2653_s25 = smov 128   ;;  %s2654_s26 = smov 8  }
  0x15   : > { %2493 = dma.hbm_to_vmem [thread:$0]  (!%p2740_p5), %s2997_s3, 512, %s297_s18, [#allocation5], %s2653_s25, %s2653_s25, %s2654_s26  }
  0x16   : > { %s2593_s29 = scalar_lea.vmem %s284_s20, 512  ;;  %p2601_p7 = scmp.lt.s32.totalorder %s284_s20, %s284_s20 }
  0x17   : > { %p2594_p0 = scmp.ne.s32.totalorder %s284_s20, %s2593_s29  ;;  %p2602_p8 = scmp.lt.s32.totalorder %s2593_s29, %s2593_s29 }
  0x19   : > { %p2596_p1 = pnand %p2594_p0, %p2558_p6  ;;  %p2603_p10 = por %p2602_p8, %p2601_p7 }
  0x1b   : > { %p2597_p4 = pneg %p2596_p1 }
  0x1d   : > { %p2604_p9 = pnand %p2603_p10, %p2597_p4 }
  0x1f   : > { %2607 = shalt.err (!%p2604_p9)
}
  0x20   : > { %2490 = dma.hbm_to_vmem [thread:$0]  (!%p2740_p5), %s2996_s2, 512, %s284_s20, [#allocation3], %s2653_s25, %s2653_s25, %s2654_s26  }
  0x21   : > { %s2619_s12 = scalar_lea.vmem %s2744_s23, 512  ;;  %p2627_p0 = scmp.lt.s32.totalorder %s2744_s23, %s2744_s23 }
  0x22   : > { %p2620_p11 = scmp.ne.s32.totalorder %s2744_s23, %s2619_s12  ;;  %p2628_p1 = scmp.lt.s32.totalorder %s2619_s12, %s2619_s12 }
  0x24   : > { %p2622_p12 = pnand %p2620_p11, %p2558_p6  ;;  %p2629_p4 = por %p2628_p1, %p2627_p0 }
  0x26   : > { %p2623_p13 = pneg %p2622_p12 }
  0x28   : > { %p2630_p7 = pnand %p2629_p4, %p2623_p13 }
  0x2a   : > { %2633 = shalt.err (!%p2630_p7)
}
  0x2b   : > { %2496 = dma.hbm_to_vmem [thread:$0]  (!%p2740_p5), %s3001_s7, 512, %s2744_s23, [#allocation5], %s2653_s25, %s2653_s25, %s2654_s26  }
  0x2c   : > { %349 = sbr.rel (%p2732_p3) target bundleno = 1259 (0x4eb), region = 60 }
  0x31   : > { %2639 = dma.done.wait (%p2728_p2), [#allocation3], 512  }
  0x32   : > { %2641 = vsyncadd (%p2728_p2), [#allocation3], 4294966784 }
  0x33   : > { %2643 = dma.done.wait (%p2728_p2), [#allocation5], 1024  }
  0x34   : > { %2645 = vsyncadd (%p2728_p2), [#allocation5], 4294966272  ;;  %s2253_s19 = sshll.u32 %s2242_s14, 1  ;;  %v507_v0 = vld [vmem:[#allocation2 + $0x18] sm:$0xff]  ;;  %v506_v2 = vld [vmem:[#allocation2 + $0x10] sm:$0xff]  ;;  %vm420_vm0 = vcmask 261120  }
  0x35   : > { %p396_p6 = scmp.lt.s32.totalorder %s2253_s19, 7  ;;  %v412_v1 = vld [vmem:[%s2995_s1 + $0x18] sm:$0xff]  ;;  %2362 = vmatprep.subr.mxu1 %v507_v0  ;;  %v411_v3 = vld [vmem:[%s2995_s1 + $0x10] sm:$0xff]  ;;  %v505_v4 = vld [vmem:[#allocation2 + $0x8] sm:$0xff]  ;;  %v2655_v14 = vmov 0.0   ;;  %vm2656_vm1 = vmmov 0  }
  0x36   : > { %2351 = vmatprep.subr.mxu0 %v412_v1  ;;  %2363 = vmatpush3.msra.mxu1 %v507_v0  ;;  %v410_v5 = vld [vmem:[%s2995_s1 + $0x8] sm:$0xff]  ;;  %v504_v6 = vld [vmem:[#allocation2] sm:$0xff]  ;;  %v593_v10 = vld [vmem:[#allocation4 + $0x18] sm:$0xff]  ;;  %vm724_vm2 = vcmask 64512   ;;  %s2657_s17 = smov 120   ;;  %s2658_s18 = smov 112  }
  0x37   : > { %s3009_s19 = smov (!%p396_p6, %s2253_s19), 7  ;;  %2352 = vmatpush3.msra.mxu0 %v412_v1  ;;  %2364 = vmatprep.subr.mxu1 %v506_v2  ;;  %v409_v7 = vld [vmem:[%s2995_s1] sm:$0xff]  ;;  %v592_v11 = vld [vmem:[#allocation4 + $0x10] sm:$0xff]  ;;  %v591_v12 = vld [vmem:[#allocation4 + $0x8] sm:$0xff]  ;;  %s2659_s20 = smov 104   ;;  %vm2055_vm3 = vcmask 130048  }
  0x38   : > { %s2254_s16 = sshll.u32 %s3009_s19, 3  ;;  %2353 = vmatprep.subr.mxu0 %v411_v3  ;;  %2365 = vmatpush3.msra.mxu1 %v506_v2  ;;  %v590_v13 = vld [vmem:[#allocation4] sm:$0xff]  ;;  %v1318_v48 = vld [vmem:[%s3003_s9 + $0x8] sm:$0xff]  ;;  %v1319_v54 = vld [vmem:[%s3003_s9 + $0x10] sm:$0xff]  ;;  %s2661_s15 = smov 16   ;;  %vm2058_vm4 = vcmask 195584  }
  0x39   : > { %s399_s26 = scalar_lea.vmem %s2994_s0, %s2254_s16  ;;  %2354 = vmatpush3.msra.mxu0 %v411_v3  ;;  %2366 = vmatprep.subr.mxu1 %v505_v4  ;;  %v2260_v15 = vld [vmem:[%s2999_s5] ss:$0 sm:$0xff]  ;;  %v1320_v58 = vld [vmem:[%s3003_s9 + $0x18] sm:$0xff]  ;;  %v1322_v0 = vld [vmem:[%s3003_s9 + $0x28] sm:$0xff]  ;;  %s2662_s14 = smov 24  }
  0x3a   : > { %2355 = vmatprep.subr.mxu0 %v410_v5  ;;  %v407_v8 = vld [vmem:[%s399_s26] sm:$0xff]  ;;  %2367 = vmatpush3.msra.mxu1 %v505_v4  ;;  %v408_v9 = vld [vmem:[%s399_s26 + $0x8] sm:$0xff]  ;;  %s405_s27 = scalar_lea.vmem %s3004_s10, %s2254_s16 }
  0x3b   : > { %2356 = vmatpush3.msra.mxu0 %v410_v5  ;;  %2368 = vmatprep.subr.mxu1 %v504_v6  ;;  %v2257_v18 = vld [vmem:[%s2998_s4] ss:$0 sm:$0xff] }
  0x3c   : > { %2357 = vmatprep.subr.mxu0 %v409_v7  ;;  %2369 = vmatpush3.msra.mxu1 %v504_v6  ;;  %v2263_v28 = vld [vmem:[%s3000_s6] ss:$0 sm:$0xff] }
  0x3d   : > { %2370 = vmatprep.mubr.msk.f32.mxu1 %vm420_vm0, %v407_v8  ;;  %2358 = vmatpush3.msra.mxu0 %v409_v7  ;;  %v1317_v44 = vld [vmem:[%s3003_s9] sm:$0xff] }
  0x3e   : > { %2359 = vmatprep.mubr.msk.f32.mxu0 %vm420_vm0, %v407_v8  ;;  %2371 = vmatmul.mubr.msk.f32.vlgmr.msra.gmra.mxu1 %vm420_vm0, %v408_v9  ;;  %v1321_v63 = vld [vmem:[%s3003_s9 + $0x20] sm:$0xff] }
  0x3f   : > { %2360 = vmatmul.mubr.msk.f32.vlgmr.msra.gmra.mxu0 %vm420_vm0, %v408_v9  ;;  %2373 = vmatprep.subr.mxu0 %v593_v10 }
  0x40   : > { %2381 = vmatprep.mubr.msk.f32.mxu0 %vm420_vm0, %v407_v8  ;;  %2374 = vmatpush3.msra.mxu0 %v593_v10  ;;  %v1324_v10 = vld [vmem:[%s3003_s9 + $0x38] sm:$0xff] }
  0x41   : > { %2375 = vmatprep.subr.mxu0 %v592_v11  ;;  %2384 = vmatprep.subr.mxu1 %v2655_v14 }
  0x42   : > { %2376 = vmatpush3.msra.mxu0 %v592_v11  ;;  %2386 = vmatprep.mubr.msk.f32.mxu1 %vm2656_vm1, %v2655_v14 }
  0x43   : > { %2377 = vmatprep.subr.mxu0 %v591_v12 }
  0x44   : > { %2378 = vmatpush3.msra.mxu0 %v591_v12 }
  0x45   : > { %2379 = vmatprep.subr.mxu0 %v590_v13 }
  0x46   : > { %2380 = vmatpush3.msra.mxu0 %v590_v13 }
  0x47   : > { %2382 = vmatmul.mubr.msk.f32.vlgmr.msra.gmra.mxu0 %vm420_vm0, %v408_v9  ;;  %2404 = vmatprep.subr.mxu0 %v2655_v14  ;;  %v1323_v9 = vld [vmem:[%s3003_s9 + $0x30] sm:$0xff] }
  0x48   : > { %2406 = vmatprep.mubr.msk.f32.mxu0 %vm2656_vm1, %v2655_v14 }
  0xfe   : > { %v2372_v16 = vpop.f32.mrf.mxu1 }
  0xff   : > { %v2361_v17 = vpop.f32.mrf.mxu0  ;;  %v587_v19 = vadd.f32 %v2372_v16, %v2260_v15 }
 0x100   : > { %v581_v20 = vpop.f32.mrf.mxu1  ;;  %v499_v22 = vadd.f32 %v2361_v17, %v2257_v18 }
 0x101   : > { %v493_v21 = vpop.f32.mrf.mxu0  ;;  %v582_v23 = vadd.f32 %v2260_v15, %v581_v20  ;;  %694 = vrot.lane.b32.xlu1 %v587_v19, %s2657_s17 }
 0x102   : > { %v494_v24 = vadd.f32 %v2257_v18, %v493_v21  ;;  %v503_v26 = vmul.f32 0.35355338, %v499_v22 }
 0x103   : > { %692 = vrot.lane.b32.xlu0 %v582_v23, %s2657_s17  ;;  %2385 = vmatpush3.xpose.msk.msra.mxu1 %vm724_vm2, %v582_v23 }
 0x104   : > { %v502_v25 = vmul.f32 0.35355338, %v494_v24  ;;  %2389 = vmatprep.subr.mxu1 %v2655_v14 }
 0x105   : > { %698 = vrot.lane.b32.xlu1 %v587_v19, %s2658_s18 }
 0x106   : > { %2387 = vmatmul.mubr.msk.f32.vlgmr.msra.gmra.mxu1 %vm724_vm2, %v502_v25 }
 0x107   : > { %696 = vrot.lane.b32.xlu0 %v582_v23, %s2658_s18  ;;  %2390 = vmatpush3.xpose.msk.msra.mxu1 %vm724_vm2, %v587_v19  ;;  %v2383_v27 = vpop.f32.mrf.mxu0 }
 0x108   : > { %2391 = vmatprep.mubr.msk.f32.mxu1 %vm2656_vm1, %v2655_v14  ;;  %2394 = vmatprep.subr.mxu1 %v2655_v14  ;;  %v2847_v29 = vadd.f32 %v2383_v27, %v2263_v28 }
 0x109   : > { %680 = vrot.lane.b32.xlu1 %v503_v26, %s2657_s17  ;;  %v667_v30 = vpop.f32.mrf.mxu0 }
 0x10a   : > { %2392 = vmatmul.mubr.msk.f32.vlgmr.msra.gmra.mxu1 %vm724_vm2, %v503_v26  ;;  %v2851_v31 = vadd.f32 %v2263_v28, %v667_v30 }
 0x10b   : > { %678 = vrot.lane.b32.xlu0 %v502_v25, %s2657_s17  ;;  %2396 = vmatprep.mubr.msk.f32.mxu1 %vm2656_vm1, %v2655_v14 }
 0x10d   : > { %684 = vrot.lane.b32.xlu1 %v503_v26, %s2658_s18 }
 0x10f   : > { %700 = vrot.lane.b32.xlu0 %v582_v23, %s2659_s20 }
 0x111   : > { %702 = vrot.lane.b32.xlu1 %v587_v19, %s2659_s20 }
 0x113   : > { %682 = vrot.lane.b32.xlu0 %v502_v25, %s2658_s18 }
 0x115   : > { %688 = vrot.lane.b32.xlu1 %v503_v26, %s2659_s20 }
 0x117   : > { %686 = vrot.lane.b32.xlu0 %v502_v25, %s2659_s20 }
 0x119   : > { %714 = vrot.lane.b32.xlu1 %v2847_v29, %s2658_s18 }
 0x11b   : > { %708 = vrot.lane.b32.xlu0 %v2847_v29, %s2657_s17 }
 0x11d   : > { %706 = vrot.lane.b32.xlu1 %v2851_v31, %s2657_s17 }
 0x121   : > { %712 = vrot.lane.b32.xlu1 %v2851_v31, %s2658_s18 }
 0x173   : > { %v695_v32 = vpop.permute.xlu1 %694 }
 0x175   : > { %v693_v33 = vpop.permute.xlu0 %692 }
 0x176   : > { %2395 = vmatpush3.xpose.msk.msra.mxu1 %vm724_vm2, %v693_v33 }
 0x177   : > { %v699_v34 = vpop.permute.xlu1 %698  ;;  %2399 = vmatprep.subr.mxu1 %v2655_v14 }
 0x179   : > { %v697_v35 = vpop.permute.xlu0 %696 }
 0x17a   : > { %2405 = vmatpush3.xpose.msk.msra.mxu0 %vm724_vm2, %v697_v35 }
 0x17b   : > { %v681_v36 = vpop.permute.xlu1 %680  ;;  %2414 = vmatprep.subr.mxu0 %v2655_v14 }
 0x17d   : > { %v679_v37 = vpop.permute.xlu0 %678 }
 0x17e   : > { %2397 = vmatmul.mubr.msk.f32.vlgmr.msra.gmra.mxu1 %vm724_vm2, %v679_v37 }
 0x17f   : > { %2400 = vmatpush3.xpose.msk.msra.mxu1 %vm724_vm2, %v695_v32  ;;  %v685_v38 = vpop.permute.xlu1 %684  ;;  %2401 = vmatprep.mubr.msk.f32.mxu1 %vm2656_vm1, %v2655_v14 }
 0x180   : > { %2409 = vmatprep.subr.mxu1 %v2655_v14 }
 0x181   : > { %v701_v39 = vpop.permute.xlu0 %700 }
 0x182   : > { %2402 = vmatmul.mubr.msk.f32.vlgmr.msra.gmra.mxu1 %vm724_vm2, %v681_v36 }
 0x183   : > { %2410 = vmatpush3.xpose.msk.msra.mxu1 %vm724_vm2, %v699_v34  ;;  %v703_v40 = vpop.permute.xlu1 %702  ;;  %2411 = vmatprep.mubr.msk.f32.mxu1 %vm2656_vm1, %v2655_v14 }
 0x184   : > { %2419 = vmatprep.subr.mxu1 %v2655_v14 }
 0x185   : > { %v683_v41 = vpop.permute.xlu0 %682 }
 0x186   : > { %2407 = vmatmul.mubr.msk.f32.vlgmr.msra.gmra.mxu0 %vm724_vm2, %v683_v41  ;;  %2412 = vmatmul.mubr.msk.f32.vlgmr.msra.gmra.mxu1 %vm724_vm2, %v685_v38 }
 0x187   : > { %2415 = vmatpush3.xpose.msk.msra.mxu0 %vm724_vm2, %v701_v39  ;;  %2420 = vmatpush3.xpose.msk.msra.mxu1 %vm724_vm2, %v703_v40  ;;  %v689_v42 = vpop.permute.xlu1 %688 }
 0x188   : > { %2416 = vmatprep.mubr.msk.f32.mxu0 %vm2656_vm1, %v2655_v14  ;;  %2421 = vmatprep.mubr.msk.f32.mxu1 %vm2656_vm1, %v2655_v14 }
 0x189   : > { %v687_v43 = vpop.permute.xlu0 %686  ;;  %2424 = vmatprep.subr.mxu0 %v2655_v14  ;;  %2429 = vmatprep.subr.mxu1 %v2655_v14 }
 0x18a   : > { %2417 = vmatmul.mubr.msk.f32.vlgmr.msra.gmra.mxu0 %vm724_vm2, %v687_v43  ;;  %2422 = vmatmul.mubr.msk.f32.vlgmr.msra.gmra.mxu1 %vm724_vm2, %v689_v42 }
 0x18b   : > { %2425 = vmatpush3.msra.mxu0 %v2851_v31  ;;  %2430 = vmatpush3.msra.mxu1 %v2847_v29  ;;  %v2914_v2 = vpop.permute.xlu1 %714 }
 0x18c   : > { %2426 = vmatprep.mubr.msk.f32.mxu0 %vm2656_vm1, %v2655_v14  ;;  %2431 = vmatprep.mubr.msk.f32.mxu1 %vm2656_vm1, %v2655_v14 }
 0x18d   : > { %2434 = vmatprep.subr.mxu0 %v2655_v14  ;;  %2439 = vmatprep.subr.mxu1 %v2655_v14  ;;  %v709_v23 = vpop.permute.xlu0 %708 }
 0x18f   : > { %v707_v18 = vpop.permute.xlu1 %706 }
 0x193   : > { %v713_v24 = vpop.permute.xlu1 %712 }
 0x1c6   : > { %v795_v45 = vpop.f32.mrf.mxu1 }
 0x1c7   : > { %v1325_v46 = vadd.f32 %v1317_v44, %v795_v45 }
 0x1c8   : > { %v2388_v47 = vpop.f32.mrf.mxu1 }
 0x1c9   : > { %v1333_v49 = vsel %vm724_vm2, %v1325_v46, -inf }
 0x1ca   : > { %1334 = vmax.xlane.f32.xlu0 %v1333_v49  ;;  %v869_v50 = vpop.f32.mrf.mxu1 }
 0x1cb   : > { %v1326_v51 = vadd.f32 %v1318_v48, %v869_v50 }
 0x1cc   : > { %v2393_v52 = vpop.f32.mrf.mxu1 }
 0x1cd   : > { %v1336_v53 = vsel %vm724_vm2, %v1326_v51, -inf }
 0x1ce   : > { %1337 = vmax.xlane.f32.xlu1 %v1336_v53 }
 0x23e   : > { %v943_v55 = vpop.f32.mrf.mxu1 }
 0x23f   : > { %v1327_v56 = vadd.f32 %v1319_v54, %v943_v55 }
 0x240   : > { %v2398_v57 = vpop.f32.mrf.mxu1 }
 0x241   : > { %v1339_v59 = vsel %vm724_vm2, %v1327_v56, -inf }
 0x242   : > { %1340 = vmax.xlane.f32.xlu0 %v1339_v59  ;;  %v1017_v60 = vpop.f32.mrf.mxu1 }
 0x243   : > { %v1328_v61 = vadd.f32 %v1320_v58, %v1017_v60 }
 0x244   : > { %v2403_v62 = vpop.f32.mrf.mxu1 }
 0x245   : > { %v1342_v1 = vsel %vm724_vm2, %v1328_v61, -inf }
 0x246   : > { %v1091_v3 = vpop.f32.mrf.mxu0  ;;  %1343 = vmax.xlane.f32.xlu0 %v1342_v1  ;;  %v1165_v4 = vpop.f32.mrf.mxu1 }
 0x247   : > { %v1329_v5 = vadd.f32 %v1321_v63, %v1091_v3  ;;  %v1330_v6 = vadd.f32 %v1322_v0, %v1165_v4 }
 0x248   : > { %v2408_v7 = vpop.f32.mrf.mxu0  ;;  %v2413_v8 = vpop.f32.mrf.mxu1 }
 0x249   : > { %v1345_v11 = vsel %vm724_vm2, %v1329_v5, -inf  ;;  %v1348_v12 = vsel %vm724_vm2, %v1330_v6, -inf }
 0x24a   : > { %v1239_v13 = vpop.f32.mrf.mxu0  ;;  %1346 = vmax.xlane.f32.xlu1 %v1345_v11  ;;  %1349 = vmax.xlane.f32.xlu0 %v1348_v12  ;;  %v1313_v15 = vpop.f32.mrf.mxu1 }
 0x24b   : > { %v1331_v16 = vadd.f32 %v1323_v9, %v1239_v13  ;;  %v1332_v17 = vadd.f32 %v1324_v10, %v1313_v15 }
 0x24c   : > { %v2418_v19 = vpop.f32.mrf.mxu0  ;;  %v2423_v20 = vpop.f32.mrf.mxu1 }
 0x24d   : > { %v1351_v21 = vsel %vm724_vm2, %v1331_v16, -inf  ;;  %v1354_v22 = vsel %vm724_vm2, %v1332_v17, -inf  ;;  %v2064_v19 = vld [vmem:[#allocation6 + $0x18] sm:$0xff]  ;;  %v2063_v20 = vld [vmem:[#allocation6 + $0x10] sm:$0xff] }
 0x24e   : > { %1352 = vmax.xlane.f32.xlu1 %v1351_v21  ;;  %1355 = vmax.xlane.f32.xlu0 %v1354_v22 }
 0x253   : > { %v1335_v25 = vpop.xlane.xlu0 %1334 }
 0x254   : > { %v1357_v26 = vsub.f32 %v1325_v46, %v1335_v25 }
 0x256   : > { %v1365_v27 = vmul.f32 1.442695, %v1357_v26 }
 0x257   : > { %v1338_v28 = vpop.xlane.xlu1 %1337 }
 0x258   : > { %2524 = vpow2.f32 %v1365_v27  ;;  %v1358_v30 = vsub.f32 %v1326_v51, %v1338_v28 }
 0x25a   : > { %v1367_v32 = vmul.f32 1.442695, %v1358_v30  ;;  %v2062_v30 = vld [vmem:[#allocation6 + $0x8] sm:$0xff] }
 0x25c   : > { %2526 = vpow2.f32 %v1367_v32 }
 0x25f   : > { %720 = vrot.lane.b32.xlu1 %v2847_v29, %s2659_s20 }
 0x264   : > { %718 = vrot.lane.b32.xlu0 %v2851_v31, %s2659_s20  ;;  %s2660_s20 = smov 8  }
 0x265   : > { %v2930_v33 = vpop.eup %2524 }
 0x266   : > { %2427 = vmatmul.mubr.msk.f32.vlgmr.msra.gmra.mxu0 %vm724_vm2, %v2930_v33  ;;  %v1381_v0 = vsel %vm724_vm2, %v2930_v33, 0.0 }
 0x267   : > { %2435 = vmatpush3.msra.mxu0 %v707_v18  ;;  %2436 = vmatprep.mubr.msk.f32.mxu0 %vm2656_vm1, %v2655_v14 }
 0x268   : > { %2444 = vmatprep.subr.mxu0 %v2655_v14 }
 0x269   : > { %v2937_v34 = vpop.eup %2526 }
 0x26a   : > { %2432 = vmatmul.mubr.msk.f32.vlgmr.msra.gmra.mxu1 %vm724_vm2, %v2937_v34 }
 0x26b   : > { %2440 = vmatpush3.msra.mxu1 %v709_v23  ;;  %2441 = vmatprep.mubr.msk.f32.mxu1 %vm2656_vm1, %v2655_v14 }
 0x26c   : > { %2449 = vmatprep.subr.mxu1 %v2655_v14 }
 0x2cb   : > { %v1341_v29 = vpop.xlane.xlu0 %1340 }
 0x2cc   : > { %v1359_v31 = vsub.f32 %v1327_v56, %v1341_v29 }
 0x2ce   : > { %v1369_v35 = vmul.f32 1.442695, %v1359_v31  ;;  %v2061_v31 = vld [vmem:[#allocation6] sm:$0xff] }
 0x2cf   : > { %v1344_v36 = vpop.xlane.xlu0 %1343 }
 0x2d0   : > { %2528 = vpow2.f32 %v1369_v35  ;;  %v1360_v37 = vsub.f32 %v1328_v61, %v1344_v36 }
 0x2d2   : > { %v1371_v38 = vmul.f32 1.442695, %v1360_v37 }
 0x2d3   : > { %v1347_v39 = vpop.xlane.xlu1 %1346  ;;  %v1350_v40 = vpop.xlane.xlu0 %1349 }
 0x2d4   : > { %2530 = vpow2.f32 %v1371_v38  ;;  %v1361_v41 = vsub.f32 %v1329_v5, %v1347_v39  ;;  %v1362_v42 = vsub.f32 %v1330_v6, %v1350_v40 }
 0x2d6   : > { %v1373_v43 = vmul.f32 1.442695, %v1361_v41  ;;  %v1375_v44 = vmul.f32 1.442695, %v1362_v42 }
 0x2d7   : > { %v1353_v45 = vpop.xlane.xlu1 %1352  ;;  %v1356_v46 = vpop.xlane.xlu0 %1355 }
 0x2d8   : > { %2532 = vpow2.f32 %v1373_v43  ;;  %v1363_v47 = vsub.f32 %v1331_v16, %v1353_v45  ;;  %v1364_v48 = vsub.f32 %v1332_v17, %v1356_v46 }
 0x2d9   : > { %2534 = vpow2.f32 %v1375_v44 }
 0x2da   : > { %v1377_v49 = vmul.f32 1.442695, %v1363_v47  ;;  %v1379_v50 = vmul.f32 1.442695, %v1364_v48 }
 0x2db   : > { %v719_v57 = vpop.permute.xlu0 %718  ;;  %v721_v59 = vpop.permute.xlu1 %720 }
 0x2dc   : > { %2536 = vpow2.f32 %v1377_v49 }
 0x2dd   : > { %v2529_v51 = vpop.eup %2528  ;;  %2538 = vpow2.f32 %v1379_v50 }
 0x2de   : > { %2437 = vmatmul.mubr.msk.f32.vlgmr.msra.gmra.mxu0 %vm724_vm2, %v2529_v51  ;;  %v1387_v52 = vsel %vm724_vm2, %v2529_v51, 0.0 }
 0x2df   : > { %2445 = vmatpush3.msra.mxu0 %v713_v24  ;;  %1388 = vadd.xlane.f32.xlu0 %v1387_v52 }
 0x2e0   : > { %2446 = vmatprep.mubr.msk.f32.mxu0 %vm2656_vm1, %v2655_v14  ;;  %2454 = vmatprep.subr.mxu0 %v2655_v14 }
 0x2e1   : > { %v2531_v53 = vpop.eup %2530 }
 0x2e2   : > { %2442 = vmatmul.mubr.msk.f32.vlgmr.msra.gmra.mxu1 %vm724_vm2, %v2531_v53  ;;  %v1390_v54 = vsel %vm724_vm2, %v2531_v53, 0.0 }
 0x2e3   : > { %2450 = vmatpush3.msra.mxu1 %v2914_v2  ;;  %1391 = vadd.xlane.f32.xlu1 %v1390_v54 }
 0x2e4   : > { %2451 = vmatprep.mubr.msk.f32.mxu1 %vm2656_vm1, %v2655_v14  ;;  %2459 = vmatprep.subr.mxu1 %v2655_v14 }
 0x2e5   : > { %v2533_v55 = vpop.eup %2532 }
 0x2e6   : > { %v2535_v56 = vpop.eup %2534  ;;  %2447 = vmatmul.mubr.msk.f32.vlgmr.msra.gmra.mxu0 %vm724_vm2, %v2533_v55  ;;  %v1393_v58 = vsel %vm724_vm2, %v2533_v55, 0.0 }
 0x2e7   : > { %2452 = vmatmul.mubr.msk.f32.vlgmr.msra.gmra.mxu1 %vm724_vm2, %v2535_v56  ;;  %2455 = vmatpush3.msra.mxu0 %v719_v57  ;;  %v1396_v63 = vsel %vm724_vm2, %v2535_v56, 0.0 }
 0x2e8   : > { %2460 = vmatpush3.msra.mxu1 %v721_v59  ;;  %1394 = vadd.xlane.f32.xlu0 %v1393_v58 }
 0x2e9   : > { %v2537_v60 = vpop.eup %2536  ;;  %2456 = vmatprep.mubr.msk.f32.mxu0 %vm2656_vm1, %v2655_v14  ;;  %2461 = vmatprep.mubr.msk.f32.mxu1 %vm2656_vm1, %v2655_v14  ;;  %v1384_v14 = vsel %vm724_vm2, %v2937_v34, 0.0 }
 0x2ea   : > { %v2539_v61 = vpop.eup %2538  ;;  %2457 = vmatmul.mubr.msk.f32.vlgmr.msra.gmra.mxu0 %vm724_vm2, %v2537_v60  ;;  %v1399_v62 = vsel %vm724_vm2, %v2537_v60, 0.0  ;;  %2464 = vmatprep.subr.mxu0 %v2064_v19 }
 0x2eb   : > { %2462 = vmatmul.mubr.msk.f32.vlgmr.msra.gmra.mxu1 %vm724_vm2, %v2539_v61  ;;  %1400 = vadd.xlane.f32.xlu1 %v1399_v62  ;;  %v1402_v1 = vsel %vm724_vm2, %v2539_v61, 0.0 }
 0x2ec   : > { %1397 = vadd.xlane.f32.xlu0 %v1396_v63  ;;  %2465 = vmatpush3.msra.mxu0 %v2064_v19 }
 0x2ed   : > { %2466 = vmatprep.subr.mxu0 %v2063_v20 }
 0x2ee   : > { %2467 = vmatpush3.msra.mxu0 %v2063_v20 }
 0x2ef   : > { %1382 = vadd.xlane.f32.xlu1 %v1381_v0  ;;  %2468 = vmatprep.subr.mxu0 %v2062_v30 }
 0x2f0   : > { %1403 = vadd.xlane.f32.xlu0 %v1402_v1  ;;  %2469 = vmatpush3.msra.mxu0 %v2062_v30 }
 0x2f1   : > { %2470 = vmatprep.subr.mxu0 %v2061_v31 }
 0x2f2   : > { %2471 = vmatpush3.msra.mxu0 %v2061_v31 }
 0x2f4   : > { %1385 = vadd.xlane.f32.xlu0 %v1384_v14 }
 0x326   : > { %v2971_v2 = vpop.f32.mrf.mxu0 }
 0x328   : > { %v2428_v3 = vpop.f32.mrf.mxu0 }
 0x32a   : > { %v2973_v4 = vpop.f32.mrf.mxu1 }
 0x32c   : > { %v2433_v5 = vpop.f32.mrf.mxu1 }
 0x368   : > { %v1389_v6 = vpop.xlane.xlu0 %1388 }
 0x369   : > { %2540 = vrcp.f32 %v1389_v6 }
 0x36c   : > { %v1392_v7 = vpop.xlane.xlu1 %1391 }
 0x36d   : > { %2542 = vrcp.f32 %v1392_v7 }
 0x371   : > { %v1395_v8 = vpop.xlane.xlu0 %1394 }
 0x372   : > { %2544 = vrcp.f32 %v1395_v8 }
 0x374   : > { %v1401_v10 = vpop.xlane.xlu1 %1400 }
 0x375   : > { %v1398_v9 = vpop.xlane.xlu0 %1397  ;;  %2546 = vrcp.f32 %v1401_v10 }
 0x376   : > { %2548 = vrcp.f32 %v1398_v9  ;;  %v2541_v11 = vpop.eup %2540 }
 0x377   : > { %v1415_v13 = vmul.f32 %v2541_v11, %v1389_v6 }
 0x378   : > { %v1383_v59 = vpop.xlane.xlu1 %1382 }
 0x379   : > { %v1404_v12 = vpop.xlane.xlu0 %1403  ;;  %v1423_v16 = vsub.f32 2.0, %v1415_v13 }
 0x37a   : > { %2550 = vrcp.f32 %v1404_v12  ;;  %v2543_v15 = vpop.eup %2542 }
 0x37b   : > { %v1416_v17 = vmul.f32 %v2543_v15, %v1392_v7  ;;  %v1431_v24 = vmul.f32 %v2541_v11, %v1423_v16  ;;  %2552 = vrcp.f32 %v1383_v59 }
 0x37d   : > { %v1424_v22 = vsub.f32 2.0, %v1416_v17  ;;  %v1386_v60 = vpop.xlane.xlu0 %1385 }
 0x37e   : > { %2554 = vrcp.f32 %v1386_v60 }
 0x37f   : > { %v2545_v18 = vpop.eup %2544  ;;  %v1432_v29 = vmul.f32 %v2543_v15, %v1424_v22 }
 0x380   : > { %v1417_v23 = vmul.f32 %v2545_v18, %v1395_v8 }
 0x382   : > { %v2547_v21 = vpop.eup %2546  ;;  %v1425_v32 = vsub.f32 2.0, %v1417_v23 }
 0x383   : > { %v2549_v25 = vpop.eup %2548  ;;  %v1419_v33 = vmul.f32 %v2547_v21, %v1401_v10 }
 0x384   : > { %v1418_v34 = vmul.f32 %v2549_v25, %v1398_v9  ;;  %v1433_v42 = vmul.f32 %v2545_v18, %v1425_v32 }
 0x385   : > { %v1427_v39 = vsub.f32 2.0, %v1419_v33 }
 0x386   : > { %v1426_v40 = vsub.f32 2.0, %v1418_v34 }
 0x387   : > { %v2551_v35 = vpop.eup %2550  ;;  %v1435_v50 = vmul.f32 %v2547_v21, %v1427_v39  ;;  %v2290_v21 = vld [vmem:[%s3002_s8] ss:$0 sm:$0xff] }
 0x388   : > { %v1420_v41 = vmul.f32 %v2551_v35, %v1404_v12  ;;  %v1434_v48 = vmul.f32 %v2549_v25, %v1426_v40  ;;  %v2553_v61 = vpop.eup %2552 }
 0x389   : > { %v1413_v62 = vmul.f32 %v2553_v61, %v1383_v59 }
 0x38a   : > { %v1428_v47 = vsub.f32 2.0, %v1420_v41 }
 0x38b   : > { %v2555_v63 = vpop.eup %2554  ;;  %v1421_v0 = vsub.f32 2.0, %v1413_v62 }
 0x38c   : > { %v1436_v56 = vmul.f32 %v2551_v35, %v1428_v47  ;;  %v1414_v1 = vmul.f32 %v2555_v63, %v1386_v60 }
 0x38d   : > { %v1429_v3 = vmul.f32 %v2553_v61, %v1421_v0 }
 0x38e   : > { %v1422_v5 = vsub.f32 2.0, %v1414_v1 }
 0x38f   : > { %v2021_v9 = vmul.f32 %v2971_v2, %v1429_v3 }
 0x390   : > { %v1430_v8 = vmul.f32 %v2555_v63, %v1422_v5 }
 0x392   : > { %v2022_v15 = vmul.f32 %v2973_v4, %v1430_v8 }
 0x39e   : > { %v1652_v26 = vpop.f32.mrf.mxu0 }
 0x39f   : > { %v2023_v27 = vmul.f32 %v1652_v26, %v1431_v24 }
 0x3a0   : > { %v2438_v28 = vpop.f32.mrf.mxu0 }
 0x3a1   : > { %2031 = vrot.lane.b32.xlu1 %v2023_v27, %s2660_s20 }
 0x3a2   : > { %v1725_v36 = vpop.f32.mrf.mxu1 }
 0x3a3   : > { %v2024_v37 = vmul.f32 %v1725_v36, %v1432_v29 }
 0x3a4   : > { %v2443_v38 = vpop.f32.mrf.mxu1 }
 0x3a5   : > { %2033 = vrot.lane.b32.xlu0 %v2024_v37, %s2660_s20 }
 0x3a6   : > { %v1798_v43 = vpop.f32.mrf.mxu0 }
 0x3a7   : > { %v2025_v44 = vmul.f32 %v1798_v43, %v1433_v42  ;;  %v1871_v45 = vpop.f32.mrf.mxu1 }
 0x3a8   : > { %v2448_v46 = vpop.f32.mrf.mxu0  ;;  %v2026_v52 = vmul.f32 %v1871_v45, %v1434_v48 }
 0x3a9   : > { %v2453_v49 = vpop.f32.mrf.mxu1  ;;  %2039 = vrot.lane.b32.xlu1 %v2025_v44, %s2661_s15 }
 0x3aa   : > { %v1944_v51 = vpop.f32.mrf.mxu0 }
 0x3ab   : > { %v2027_v53 = vmul.f32 %v1944_v51, %v1435_v50  ;;  %v2017_v54 = vpop.f32.mrf.mxu1 }
 0x3ac   : > { %v2458_v55 = vpop.f32.mrf.mxu0  ;;  %v2028_v58 = vmul.f32 %v2017_v54, %v1436_v56 }
 0x3ad   : > { %v2463_v57 = vpop.f32.mrf.mxu1  ;;  %2047 = vrot.lane.b32.xlu0 %v2027_v53, %s2662_s14  ;;  %2041 = vrot.lane.b32.xlu1 %v2026_v52, %s2661_s15 }
 0x3b1   : > { %2049 = vrot.lane.b32.xlu1 %v2028_v58, %s2662_s14 }
 0x413   : > { %v2032_v14 = vpop.permute.xlu1 %2031 }
 0x414   : > { %v2053_v10 = vsel %vm724_vm2, %v2021_v9, %v2032_v14 }
 0x417   : > { %v2034_v6 = vpop.permute.xlu0 %2033 }
 0x418   : > { %v2054_v17 = vsel %vm724_vm2, %v2022_v15, %v2034_v6 }
 0x41b   : > { %v2040_v7 = vpop.permute.xlu1 %2039 }
 0x41c   : > { %v2056_v11 = vsel %vm2055_vm3, %v2053_v10, %v2040_v7 }
 0x41f   : > { %v2048_v12 = vpop.permute.xlu0 %2047  ;;  %v2042_v13 = vpop.permute.xlu1 %2041 }
 0x420   : > { %v2059_v16 = vsel %vm2058_vm4, %v2056_v11, %v2048_v12  ;;  %v2057_v18 = vsel %vm2055_vm3, %v2054_v17, %v2042_v13 }
 0x421   : > { %2472 = vmatprep.mubr.msk.f32.mxu0 %vm420_vm0, %v2059_v16 }
 0x423   : > { %v2050_v19 = vpop.permute.xlu1 %2049 }
 0x424   : > { %v2060_v20 = vsel %vm2058_vm4, %v2057_v18, %v2050_v19 }
 0x425   : > { %2473 = vmatmul.mubr.msk.f32.vlgmr.msra.gmra.mxu0 %vm420_vm0, %v2060_v20 }
 0x4e5   : > { %v2474_v2 = vpop.f32.mrf.mxu0 }
 0x4e6   : > { %v2150_v23 = vadd.f32 %v2474_v2, %v2290_v21 }
 0x4e7   : > { %v2144_v4 = vpop.f32.mrf.mxu0 }
 0x4e8   : > { %v2145_v22 = vadd.f32 %v2290_v21, %v2144_v4  ;;  %2154 = vst.msk [vmem:[%s405_s27 + $0x8] sm:$0xff] %vm420_vm0, %v2150_v23 }
 0x4ea   : > { %2153 = vst.msk [vmem:[%s405_s27] sm:$0xff] %vm420_vm0, %v2145_v22 }
 0x4eb PF: > { %s22_s13 = sadd.s32 1, %s2648_s13  }
 0x4ec   : > { %p19_p2 = scmp.ge.s32.totalorder %s22_s13, 6  }
 0x4ee   :  { %21 = sbr.rel (!%p19_p2) target bundleno = 2 (0x2), region = 103 }
 0x4f3   :  { %2177 = vsyncpa [#allocation3], 1 }
 0x4f4   :  { %2179 = vsyncpa [#allocation3 + $0x1], 1 }
 0x4f5   :  { %2180 = vsyncpa [#allocation5], 1 }

</bundles_post_ra>
